<compile_context>
chip_gen: v7x
topology: tpu7x:2x2x1
jax: 0.10.0
libtpu: 0.0.40
codegen_flags: <defaults>
</compile_context>

<pallas_src>
import functools

import jax
import jax.numpy as jnp
from jax.experimental import pallas as pl
from jax.experimental.pallas import tpu as pltpu

_LANE = 128     # TPU lane width (last dim)
_SUBLANE = 8    # TPU sublane width (second-to-last dim)


def _round_up(n, m):
    return ((n + m - 1) // m) * m


def _apply_activation(y, activation):
    if activation == "ReLU":
        return jnp.maximum(y, 0.0)
    if activation == "Tanh":
        return jnp.tanh(y)
    if activation == "Sigmoid":
        return jax.nn.sigmoid(y)
    if activation is None:
        return y
    raise ValueError(f"unknown activation: {activation}")


def _mlp_fused_kernel(x_ref, *refs, num_layers, activation, compute_dtype):
    """Whole MLP on one batch-tile block; all weights resident in VMEM.

    refs = (w_0, b_0, w_1, b_1, ..., w_{L-1}, b_{L-1}, o_ref).
    MXU matmuls in `compute_dtype` (bf16 by default) with f32 accumulation;
    bias add + activation in f32. Final layer has no activation.
    """
    o_ref = refs[-1]
    h = x_ref[...]                      # already compute_dtype (cast in wrapper)
    y = None
    for l in range(num_layers):         # static unroll: num_layers is small
        w = refs[2 * l][...]
        b = refs[2 * l + 1][...]        # (1, out) f32 -> broadcasts over batch
        y = jnp.dot(h, w, preferred_element_type=jnp.float32) + b
        if l < num_layers - 1:
            y = _apply_activation(y, activation)
            h = y.astype(compute_dtype)
    o_ref[...] = y.astype(o_ref.dtype)


def mlp_forward(x, params, activation="ReLU", *, compute_dtype=jnp.bfloat16,
                batch_tile=128):
    """Fused MLP forward. x: (B, in_dim); params: list of (w (in,out), b (out,))."""
    B, in_dim = x.shape
    num_layers = len(params)
    out_dim = params[-1][0].shape[1]

    # ---- pad to TPU-friendly sizes (lane-dense features, sublane batch) ----
    Bp = _round_up(B, _SUBLANE)
    tb = min(batch_tile, Bp)
    Bp = _round_up(Bp, tb)                          # grid must divide evenly
    Kp = _round_up(in_dim, _LANE)

    x_p = jnp.zeros((Bp, Kp), compute_dtype).at[:B, :in_dim].set(
        x.astype(compute_dtype))

    padded = []
    prev_out = Kp
    for (w, b) in params:
        d_in, d_out = w.shape
        p_in, p_out = prev_out, _round_up(d_out, _LANE)
        w_p = jnp.zeros((p_in, p_out), compute_dtype).at[:d_in, :d_out].set(
            w.astype(compute_dtype))
        b_p = jnp.zeros((1, p_out), jnp.float32).at[0, :d_out].set(
            b.astype(jnp.float32))
        padded.append((w_p, b_p))
        prev_out = p_out
    Op = prev_out

    flat_wb, wb_specs = [], []
    for (w_p, b_p) in padded:
        flat_wb += [w_p, b_p]
        # Constant index_map: weights/bias are a one-time DMA, stay resident
        # in VMEM across all batch-tile grid steps.
        wb_specs += [pl.BlockSpec(w_p.shape, lambda i: (0, 0)),
                     pl.BlockSpec(b_p.shape, lambda i: (0, 0))]

    # ---- explicit VMEM budget (double-buffered inputs + headroom) ---------
    def _nbytes(a):
        return a.size * a.dtype.itemsize
    footprint = 2 * sum(_nbytes(a) for a in flat_wb)
    footprint += 2 * tb * Kp * jnp.dtype(compute_dtype).itemsize   # x tile x2
    footprint += 2 * tb * Op * 4                                   # out tile x2
    vmem_limit = min(2 * footprint + (4 << 20), 48 << 20)

    kernel = functools.partial(
        _mlp_fused_kernel, num_layers=num_layers, activation=activation,
        compute_dtype=compute_dtype)

    out_p = pl.pallas_call(
        kernel,
        out_shape=jax.ShapeDtypeStruct((Bp, Op), jnp.float32),
        grid_spec=pltpu.PrefetchScalarGridSpec(
            num_scalar_prefetch=0,
            grid=(Bp // tb,),
            in_specs=[pl.BlockSpec((tb, Kp), lambda i: (i, 0))] + wb_specs,
            out_specs=pl.BlockSpec((tb, Op), lambda i: (i, 0)),
        ),
        compiler_params=pltpu.CompilerParams(
            dimension_semantics=("parallel",),   # batch tiles independent (2 TCs on v7x)
            vmem_limit_bytes=int(vmem_limit),
        ),
    )(x_p, *flat_wb)

    return out_p[:B, :out_dim].astype(x.dtype)


def init_mlp_params(key, input_dim, output_dim, hidden_size, hidden_layers,
                    dtype=jnp.float32):
    """Deterministic init matching the PyTorch layer shapes (weights as (in, out))."""
    sizes = [(input_dim, hidden_size)] + [(hidden_size, hidden_size)] * hidden_layers
    sizes = sizes + [(hidden_size, output_dim)]
    params = []
    for (fan_in, fan_out) in sizes:
        key, kw, kb = jax.random.split(key, 3)
        bound = 1.0 / (fan_in ** 0.5)   # PyTorch default Linear init
        w = jax.random.uniform(kw, (fan_in, fan_out), dtype, -bound, bound)
        b = jax.random.uniform(kb, (fan_out,), dtype, -bound, bound)
        params.append((w, b))
    return params


def _reference_forward(x, params, activation, compute_dtype):
    """Plain-JAX reference mirroring the kernel's bf16-matmul / f32-accumulate math."""
    h = x.astype(compute_dtype)
    y = None
    for i, (w, b) in enumerate(params):
        y = jnp.dot(h, w.astype(compute_dtype),
                    preferred_element_type=jnp.float32) + b.astype(jnp.float32)
        if i < len(params) - 1:
            y = _apply_activation(y, activation)
            h = y.astype(compute_dtype)
    return y


if __name__ == "__main__":
    # MNIST-flavoured shapes: batch=8, input_dim=784, hidden=32,
    # hidden_layers=2, output_dim=10.
    key = jax.random.PRNGKey(0)
    key, kx = jax.random.split(key)

    batch = 8
    input_dim = 784
    output_dim = 10
    hidden_size = 32
    hidden_layers = 2

    x = jax.random.normal(kx, (batch, input_dim), dtype=jnp.float32)
    params = init_mlp_params(key, input_dim, output_dim, hidden_size,
                             hidden_layers)

    out = mlp_forward(x, params, activation="ReLU")
    out = jax.block_until_ready(out)

    ref = _reference_forward(x, params, "ReLU", jnp.bfloat16)
    assert out.shape == (batch, output_dim)
    assert jnp.allclose(out, ref, atol=2e-3, rtol=2e-3), (
        float(jnp.max(jnp.abs(out - ref))))

    print("KERNEL_OK")
</pallas_src>

<mosaic_0001>
module attributes {stable_mosaic.version = 11 : i64} {
  func.func @_mlp_fused_kernel(%arg0: i32, %arg1: memref<8x896xbf16, #tpu.memory_space<vmem>>, %arg2: memref<896x128xbf16, #tpu.memory_space<vmem>>, %arg3: memref<1x128xf32, #tpu.memory_space<vmem>>, %arg4: memref<128x128xbf16, #tpu.memory_space<vmem>>, %arg5: memref<1x128xf32, #tpu.memory_space<vmem>>, %arg6: memref<128x128xbf16, #tpu.memory_space<vmem>>, %arg7: memref<1x128xf32, #tpu.memory_space<vmem>>, %arg8: memref<128x128xbf16, #tpu.memory_space<vmem>>, %arg9: memref<1x128xf32, #tpu.memory_space<vmem>>, %arg10: memref<8x128xf32, #tpu.memory_space<vmem>>) attributes {dimension_semantics = [#tpu.dimension_semantics<parallel>], iteration_bounds = array<i64: 1>, scalar_prefetch = 0 : i64, scratch_operands = 0 : i64, tpu.core_type = #tpu.core_type<tc>, window_params = [{transform_indices = @transform_0, window_bounds = array<i64: 8, 896>}, {pipeline_mode = #tpu.pipeline_mode<synchronous>, transform_indices = @transform_1, window_bounds = array<i64: 896, 128>}, {pipeline_mode = #tpu.pipeline_mode<synchronous>, transform_indices = @transform_2, window_bounds = array<i64: 1, 128>}, {pipeline_mode = #tpu.pipeline_mode<synchronous>, transform_indices = @transform_3, window_bounds = array<i64: 128, 128>}, {pipeline_mode = #tpu.pipeline_mode<synchronous>, transform_indices = @transform_4, window_bounds = array<i64: 1, 128>}, {pipeline_mode = #tpu.pipeline_mode<synchronous>, transform_indices = @transform_5, window_bounds = array<i64: 128, 128>}, {pipeline_mode = #tpu.pipeline_mode<synchronous>, transform_indices = @transform_6, window_bounds = array<i64: 1, 128>}, {pipeline_mode = #tpu.pipeline_mode<synchronous>, transform_indices = @transform_7, window_bounds = array<i64: 128, 128>}, {pipeline_mode = #tpu.pipeline_mode<synchronous>, transform_indices = @transform_8, window_bounds = array<i64: 1, 128>}, {transform_indices = @transform_9, window_bounds = array<i64: 8, 128>}]} {
    %c0 = arith.constant 0 : index
    %c0_0 = arith.constant 0 : index
    %0 = vector.load %arg1[%c0, %c0_0] : memref<8x896xbf16, #tpu.memory_space<vmem>>, vector<8x896xbf16>
    %c0_1 = arith.constant 0 : index
    %c0_2 = arith.constant 0 : index
    %1 = vector.load %arg2[%c0_1, %c0_2] : memref<896x128xbf16, #tpu.memory_space<vmem>>, vector<896x128xbf16>
    %c0_3 = arith.constant 0 : index
    %c0_4 = arith.constant 0 : index
    %2 = vector.load %arg3[%c0_3, %c0_4] : memref<1x128xf32, #tpu.memory_space<vmem>>, vector<1x128xf32>
    %cst = arith.constant dense<0.000000e+00> : vector<8x128xf32>
    %3 = tpu.matmul %0, %1, %cst {dimension_numbers = #tpu.dot_dimension_numbers<[1], [0], [0], [1], [0, 0, 1, 1], [], []>} : vector<8x896xbf16>, vector<896x128xbf16>, vector<8x128xf32> -> vector<8x128xf32>
    %4 = vector.broadcast %2 : vector<1x128xf32> to vector<8x128xf32>
    %5 = arith.addf %3, %4 : vector<8x128xf32>
    %cst_5 = arith.constant 0.000000e+00 : f32
    %6 = vector.broadcast %cst_5 : f32 to vector<8x128xf32>
    %7 = arith.maximumf %5, %6 : vector<8x128xf32>
    %8 = arith.truncf %7 : vector<8x128xf32> to vector<8x128xbf16>
    %c0_6 = arith.constant 0 : index
    %c0_7 = arith.constant 0 : index
    %9 = vector.load %arg4[%c0_6, %c0_7] : memref<128x128xbf16, #tpu.memory_space<vmem>>, vector<128x128xbf16>
    %c0_8 = arith.constant 0 : index
    %c0_9 = arith.constant 0 : index
    %10 = vector.load %arg5[%c0_8, %c0_9] : memref<1x128xf32, #tpu.memory_space<vmem>>, vector<1x128xf32>
    %cst_10 = arith.constant dense<0.000000e+00> : vector<8x128xf32>
    %11 = tpu.matmul %8, %9, %cst_10 {dimension_numbers = #tpu.dot_dimension_numbers<[1], [0], [0], [1], [0, 0, 1, 1], [], []>} : vector<8x128xbf16>, vector<128x128xbf16>, vector<8x128xf32> -> vector<8x128xf32>
    %12 = vector.broadcast %10 : vector<1x128xf32> to vector<8x128xf32>
    %13 = arith.addf %11, %12 : vector<8x128xf32>
    %cst_11 = arith.constant 0.000000e+00 : f32
    %14 = vector.broadcast %cst_11 : f32 to vector<8x128xf32>
    %15 = arith.maximumf %13, %14 : vector<8x128xf32>
    %16 = arith.truncf %15 : vector<8x128xf32> to vector<8x128xbf16>
    %c0_12 = arith.constant 0 : index
    %c0_13 = arith.constant 0 : index
    %17 = vector.load %arg6[%c0_12, %c0_13] : memref<128x128xbf16, #tpu.memory_space<vmem>>, vector<128x128xbf16>
    %c0_14 = arith.constant 0 : index
    %c0_15 = arith.constant 0 : index
    %18 = vector.load %arg7[%c0_14, %c0_15] : memref<1x128xf32, #tpu.memory_space<vmem>>, vector<1x128xf32>
    %cst_16 = arith.constant dense<0.000000e+00> : vector<8x128xf32>
    %19 = tpu.matmul %16, %17, %cst_16 {dimension_numbers = #tpu.dot_dimension_numbers<[1], [0], [0], [1], [0, 0, 1, 1], [], []>} : vector<8x128xbf16>, vector<128x128xbf16>, vector<8x128xf32> -> vector<8x128xf32>
    %20 = vector.broadcast %18 : vector<1x128xf32> to vector<8x128xf32>
    %21 = arith.addf %19, %20 : vector<8x128xf32>
    %cst_17 = arith.constant 0.000000e+00 : f32
    %22 = vector.broadcast %cst_17 : f32 to vector<8x128xf32>
    %23 = arith.maximumf %21, %22 : vector<8x128xf32>
    %24 = arith.truncf %23 : vector<8x128xf32> to vector<8x128xbf16>
    %c0_18 = arith.constant 0 : index
    %c0_19 = arith.constant 0 : index
    %25 = vector.load %arg8[%c0_18, %c0_19] : memref<128x128xbf16, #tpu.memory_space<vmem>>, vector<128x128xbf16>
    %c0_20 = arith.constant 0 : index
    %c0_21 = arith.constant 0 : index
    %26 = vector.load %arg9[%c0_20, %c0_21] : memref<1x128xf32, #tpu.memory_space<vmem>>, vector<1x128xf32>
    %cst_22 = arith.constant dense<0.000000e+00> : vector<8x128xf32>
    %27 = tpu.matmul %24, %25, %cst_22 {dimension_numbers = #tpu.dot_dimension_numbers<[1], [0], [0], [1], [0, 0, 1, 1], [], []>} : vector<8x128xbf16>, vector<128x128xbf16>, vector<8x128xf32> -> vector<8x128xf32>
    %28 = vector.broadcast %26 : vector<1x128xf32> to vector<8x128xf32>
    %29 = arith.addf %27, %28 : vector<8x128xf32>
    %c0_23 = arith.constant 0 : index
    %c0_24 = arith.constant 0 : index
    %30 = vector.load %arg10[%c0_23, %c0_24] : memref<8x128xf32, #tpu.memory_space<vmem>>, vector<8x128xf32>
    tpu.vector_store %arg10[%c0_23, %c0_24], %29 {strides = array<i32>} : memref<8x128xf32, #tpu.memory_space<vmem>>, vector<8x128xf32>,
    return
  }
  func.func @transform_0(%arg0: i32) -> (i32, i32) {
    %c0_i32 = arith.constant 0 : i32
    %c0_i32_0 = arith.constant 0 : i32
    return %arg0, %c0_i32 : i32, i32
  }
  func.func @transform_1(%arg0: i32) -> (i32, i32) {
    %c0_i32 = arith.constant 0 : i32
    %c0_i32_0 = arith.constant 0 : i32
    %c0_i32_1 = arith.constant 0 : i32
    return %c0_i32, %c0_i32_0 : i32, i32
  }
  func.func @transform_2(%arg0: i32) -> (i32, i32) {
    %c0_i32 = arith.constant 0 : i32
    %c0_i32_0 = arith.constant 0 : i32
    %c0_i32_1 = arith.constant 0 : i32
    return %c0_i32, %c0_i32_0 : i32, i32
  }
  func.func @transform_3(%arg0: i32) -> (i32, i32) {
    %c0_i32 = arith.constant 0 : i32
    %c0_i32_0 = arith.constant 0 : i32
    %c0_i32_1 = arith.constant 0 : i32
    return %c0_i32, %c0_i32_0 : i32, i32
  }
  func.func @transform_4(%arg0: i32) -> (i32, i32) {
    %c0_i32 = arith.constant 0 : i32
    %c0_i32_0 = arith.constant 0 : i32
    %c0_i32_1 = arith.constant 0 : i32
    return %c0_i32, %c0_i32_0 : i32, i32
  }
  func.func @transform_5(%arg0: i32) -> (i32, i32) {
    %c0_i32 = arith.constant 0 : i32
    %c0_i32_0 = arith.constant 0 : i32
    %c0_i32_1 = arith.constant 0 : i32
    return %c0_i32, %c0_i32_0 : i32, i32
  }
  func.func @transform_6(%arg0: i32) -> (i32, i32) {
    %c0_i32 = arith.constant 0 : i32
    %c0_i32_0 = arith.constant 0 : i32
    %c0_i32_1 = arith.constant 0 : i32
    return %c0_i32, %c0_i32_0 : i32, i32
  }
  func.func @transform_7(%arg0: i32) -> (i32, i32) {
    %c0_i32 = arith.constant 0 : i32
    %c0_i32_0 = arith.constant 0 : i32
    %c0_i32_1 = arith.constant 0 : i32
    return %c0_i32, %c0_i32_0 : i32, i32
  }
  func.func @transform_8(%arg0: i32) -> (i32, i32) {
    %c0_i32 = arith.constant 0 : i32
    %c0_i32_0 = arith.constant 0 : i32
    %c0_i32_1 = arith.constant 0 : i32
    return %c0_i32, %c0_i32_0 : i32, i32
  }
  func.func @transform_9(%arg0: i32) -> (i32, i32) {
    %c0_i32 = arith.constant 0 : i32
    %c0_i32_0 = arith.constant 0 : i32
    return %arg0, %c0_i32 : i32, i32
  }
}

</mosaic_0001>

<bundles_post_ra>
// kernel: tpu_custom_call.1
= control target key start
LH: loop header
LB: loop body
LE: loop exit
PB: predicated region body
PF: predicated region fallthrough
CT: control target
= control target key end

     0   :  { %14 = vsyncpa [#allocation3], 0  ;;  %s1807_s0 = inlined_call_operand.hbm [shape: bf16[8,896], index: 0, kind: input, shape index: {}]   ;;  %s1808_s1 = inlined_call_operand.hbm [shape: bf16[896,128], index: 1, kind: input, shape index: {}]   ;;  %s1809_s2 = inlined_call_operand.vmem [shape: f32[1,128], index: 2, kind: input, shape index: {}]   ;;  %s1810_s3 = inlined_call_operand.hbm [shape: bf16[128,128], index: 3, kind: input, shape index: {}]   ;;  %s1811_s4 = inlined_call_operand.vmem [shape: f32[1,128], index: 4, kind: input, shape index: {}]   ;;  %s1812_s5 = inlined_call_operand.hbm [shape: bf16[128,128], index: 5, kind: input, shape index: {}]   ;;  %s1813_s6 = inlined_call_operand.vmem [shape: f32[1,128], index: 6, kind: input, shape index: {}]   ;;  %s1814_s7 = inlined_call_operand.hbm [shape: bf16[128,128], index: 7, kind: input, shape index: {}]   ;;  %s1815_s8 = inlined_call_operand.vmem [shape: f32[1,128], index: 8, kind: input, shape index: {}]   ;;  %s1816_s9 = inlined_call_operand.hbm [shape: f32[8,128], index: 9, kind: output, shape index: {}]  }
   0x1   :  { %15 = vsyncpa [#allocation6], 0 }
   0x2   :  { %16 = vsyncpa [#allocation9], 0 }
   0x3   :  { %17 = vsyncpa [#allocation4], 0  ;;  %s1611_s30 = smov [#allocation5]   ;;  %s1471_s13 = scalar_lea.hbm %s1808_s1, 7168 }
   0x4   :  { %s33_s10 = sshll.u32 %s1611_s30, 4  ;;  %p1472_p0 = scmp.ne.s32.totalorder %s1808_s1, %s1471_s13  ;;  %s34_s10 = int_to_ptr.vmem [resolvable:$true] %s33_s10 }
   0x5   :  { %p1475_p1 = scmp.lt.u32.totalorder %s1471_s13, %s1808_s1 }
   0x7   :  { %p1477_p2 = pnand %p1475_p1, %p1472_p0 }
   0x9   :  { %1480 = shalt.err (!%p1477_p2)
}
   0xa   :  { %s1481_s18 = scalar_lea.vmem %s34_s10, 7168  ;;  %p1486_p4 = scmp.lt.s32.totalorder %s34_s10, %s34_s10 }
   0xb   :  { %p1482_p3 = scmp.ne.s32.totalorder %s34_s10, %s1481_s18  ;;  %p1487_p5 = scmp.lt.s32.totalorder %s1481_s18, %s1481_s18 }
   0xd   :  { %p1488_p6 = por %p1487_p5, %p1486_p4 }
   0xf   :  { %p1489_p7 = pnand %p1488_p6, %p1482_p3 }
  0x11   :  { %1492 = shalt.err (!%p1489_p7)
}
  0x12   :  { %s1612_s19 = smov 64   ;;  %s1613_s20 = smov 4  }
  0x13   :  { %39 = dma.hbm_to_vmem [thread:$0]  %s1808_s1, 7168, %s34_s10, [#allocation6], %s1612_s19, %s1612_s19, %s1613_s20  }
  0x14   :  { %s1614_s23 = smov [#allocation8]   ;;  %s1615_s25 = smov [#allocation2]  }
  0x15   :  { %s61_s24 = sshll.u32 %s1614_s23, 4  ;;  %s24_s26 = sshll.u32 %s1615_s25, 4  ;;  %s62_s24 = int_to_ptr.vmem [resolvable:$true] %s61_s24  ;;  %s25_s26 = int_to_ptr.vmem [resolvable:$true] %s24_s26 }
  0x16   :  { %s1493_s29 = scalar_lea.hbm %s1812_s5, 1024 }
  0x17   :  { %p1494_p8 = scmp.ne.s32.totalorder %s1812_s5, %s1493_s29  ;;  %p1497_p9 = scmp.lt.u32.totalorder %s1493_s29, %s1812_s5 }
  0x19   :  { %p1499_p10 = pnand %p1497_p9, %p1494_p8 }
  0x1b   :  { %1502 = shalt.err (!%p1499_p10)
}
  0x1c   :  { %s1503_s1 = scalar_lea.vmem %s62_s24, 1024  ;;  %p1508_p12 = scmp.lt.s32.totalorder %s62_s24, %s62_s24 }
  0x1d   :  { %p1504_p11 = scmp.ne.s32.totalorder %s62_s24, %s1503_s1  ;;  %p1509_p13 = scmp.lt.s32.totalorder %s1503_s1, %s1503_s1 }
  0x1f   :  { %p1510_p0 = por %p1509_p13, %p1508_p12 }
  0x21   :  { %p1511_p1 = pnand %p1510_p0, %p1504_p11 }
  0x23   :  { %1514 = shalt.err (!%p1511_p1)
}
  0x24   :  { %67 = dma.hbm_to_vmem [thread:$0]  %s1812_s5, 1024, %s62_s24, [#allocation9], %s1612_s19, %s1612_s19, %s1613_s20  }
  0x25   :  { %s1515_s17 = scalar_lea.hbm %s1807_s0, 448 }
  0x26   :  { %p1516_p2 = scmp.ne.s32.totalorder %s1807_s0, %s1515_s17  ;;  %p1519_p3 = scmp.lt.u32.totalorder %s1515_s17, %s1807_s0 }
  0x28   :  { %p1521_p4 = pnand %p1519_p3, %p1516_p2 }
  0x2a   :  { %1524 = shalt.err (!%p1521_p4)
}
  0x2b   :  { %s1525_s25 = scalar_lea.vmem %s25_s26, 448  ;;  %p1530_p6 = scmp.lt.s32.totalorder %s25_s26, %s25_s26 }
  0x2c   :  { %p1526_p5 = scmp.ne.s32.totalorder %s25_s26, %s1525_s25  ;;  %p1531_p7 = scmp.lt.s32.totalorder %s1525_s25, %s1525_s25 }
  0x2e   :  { %p1532_p8 = por %p1531_p7, %p1530_p6 }
  0x30   :  { %p1533_p9 = pnand %p1532_p8, %p1526_p5 }
  0x32   :  { %1536 = shalt.err (!%p1533_p9)
}
  0x33   :  { %27 = dma.hbm_to_vmem [thread:$0]  %s1807_s0, 448, %s25_s26, [#allocation3]  }
  0x34   :  { %s1616_s27 = smov [#allocation7]   ;;  %s1617_s29 = smov [#allocation10]  }
  0x35   :  { %s47_s28 = sshll.u32 %s1616_s27, 4  ;;  %s75_s30 = sshll.u32 %s1617_s29, 4  ;;  %s48_s28 = int_to_ptr.vmem [resolvable:$true] %s47_s28  ;;  %s76_s30 = int_to_ptr.vmem [resolvable:$true] %s75_s30 }
  0x36   :  { %s1537_s13 = scalar_lea.hbm %s1810_s3, 1024 }
  0x37   :  { %p1538_p10 = scmp.ne.s32.totalorder %s1810_s3, %s1537_s13  ;;  %p1541_p11 = scmp.lt.u32.totalorder %s1537_s13, %s1810_s3 }
  0x39   :  { %p1543_p12 = pnand %p1541_p11, %p1538_p10 }
  0x3b   :  { %1546 = shalt.err (!%p1543_p12)
}
  0x3c   :  { %s1547_s0 = scalar_lea.vmem %s48_s28, 1024  ;;  %p1552_p0 = scmp.lt.s32.totalorder %s48_s28, %s48_s28 }
  0x3d   :  { %p1548_p13 = scmp.ne.s32.totalorder %s48_s28, %s1547_s0  ;;  %p1553_p1 = scmp.lt.s32.totalorder %s1547_s0, %s1547_s0 }
  0x3f   :  { %p1554_p2 = por %p1553_p1, %p1552_p0 }
  0x41   :  { %p1555_p3 = pnand %p1554_p2, %p1548_p13 }
  0x43   :  { %1558 = shalt.err (!%p1555_p3)
}
  0x44   :  { %53 = dma.hbm_to_vmem [thread:$0]  %s1810_s3, 1024, %s48_s28, [#allocation6], %s1612_s19, %s1612_s19, %s1613_s20  }
  0x45   :  { %s1559_s21 = scalar_lea.hbm %s1814_s7, 1024 }
  0x46   :  { %p1560_p4 = scmp.ne.s32.totalorder %s1814_s7, %s1559_s21  ;;  %p1563_p5 = scmp.lt.u32.totalorder %s1559_s21, %s1814_s7 }
  0x48   :  { %p1565_p6 = pnand %p1563_p5, %p1560_p4 }
  0x4a   :  { %1568 = shalt.err (!%p1565_p6)
}
  0x4b   :  { %s1569_s24 = scalar_lea.vmem %s76_s30, 1024  ;;  %p1574_p8 = scmp.lt.s32.totalorder %s76_s30, %s76_s30 }
  0x4c   :  { %p1570_p7 = scmp.ne.s32.totalorder %s76_s30, %s1569_s24  ;;  %p1575_p9 = scmp.lt.s32.totalorder %s1569_s24, %s1569_s24 }
  0x4e   :  { %p1576_p10 = por %p1575_p9, %p1574_p8 }
  0x50   :  { %p1577_p11 = pnand %p1576_p10, %p1570_p7 }
  0x52   :  { %1580 = shalt.err (!%p1577_p11)
}
  0x53   :  { %81 = dma.hbm_to_vmem [thread:$0]  %s1814_s7, 1024, %s76_s30, [#allocation9], %s1612_s19, %s1612_s19, %s1613_s20  }
  0x54   :  { %1603 = dma.done.wait [#allocation3], 448  }
  0x55   :  { %1604 = vsyncadd [#allocation3], 4294966848 }
  0x56   :  { %1605 = dma.done.wait [#allocation6], 8192  }
  0x57   :  { %1606 = vsyncadd [#allocation6], 4294959104 }
  0x58   :  { %1607 = dma.done.wait [#allocation9], 2048  }
  0x59   :  { %1608 = vsyncadd [#allocation9], 4294965248  ;;  %v1384_v0 = vld [vmem:[#allocation5 + $0x40] sm:$0xff]   ;;  %v1388_v4 = vld [vmem:[#allocation5 + $0x48] sm:$0xff]   ;;  %v1618_v42 = vmov 0.0   ;;  %vm1619_vm0 = vmmov 0  }
  0x5a   :  { %v1385_v1 = vld [vmem:[#allocation5] sm:$0xff]   ;;  %1192 = vmatprep.subr.bf16.mxu0 %v1384_v0  ;;  %v1389_v5 = vld [vmem:[#allocation5 + $0x8] sm:$0xff]   ;;  %v1392_v8 = vld [vmem:[#allocation5 + $0x50] sm:$0xff]   ;;  %s1620_s11 = smov [#allocation11]  }
  0x5b   :  { %v1386_v2 = vld [vmem:[#allocation5 + $0xc0] sm:$0xff]   ;;  %1193 = vmatpush3.bf16.msra.mxu0 %v1385_v1  ;;  %v1390_v6 = vld [vmem:[#allocation5 + $0xc8] sm:$0xff]   ;;  %v1393_v9 = vld [vmem:[#allocation5 + $0x10] sm:$0xff]   ;;  %s1090_s12 = sshll.u32 %s1620_s11, 4  ;;  %s1091_s12 = int_to_ptr.vmem [resolvable:$true] %s1090_s12 }
  0x5c   :  { %v1387_v3 = vld [vmem:[#allocation5 + $0x80] sm:$0xff]   ;;  %1214 = vmatprep.subr.bf16.mxu1 %v1386_v2  ;;  %1194 = vmatprep.subr.bf16.mxu0 %v1388_v4  ;;  %v1391_v7 = vld [vmem:[#allocation5 + $0x88] sm:$0xff]   ;;  %v1394_v10 = vld [vmem:[#allocation5 + $0xd0] sm:$0xff]   ;;  %p1586_p13 = scmp.lt.s32.totalorder %s1091_s12, %s1091_s12 }
  0x5d   :  { %1215 = vmatpush3.bf16.msra.mxu1 %v1387_v3  ;;  %v1395_v11 = vld [vmem:[#allocation5 + $0x90] sm:$0xff]   ;;  %v1396_v12 = vld [vmem:[#allocation5 + $0x58] sm:$0xff]   ;;  %v1400_v16 = vld [vmem:[#allocation5 + $0x60] sm:$0xff]  }
  0x5e   :  { %1216 = vmatprep.subr.bf16.mxu1 %v1390_v6  ;;  %v1397_v13 = vld [vmem:[#allocation5 + $0x18] sm:$0xff]   ;;  %v1401_v17 = vld [vmem:[#allocation5 + $0x20] sm:$0xff]   ;;  %v1404_v20 = vld [vmem:[#allocation5 + $0x68] sm:$0xff]  }
  0x5f   :  { %1195 = vmatpush3.bf16.msra.mxu0 %v1389_v5  ;;  %v1398_v14 = vld [vmem:[#allocation5 + $0xd8] sm:$0xff]   ;;  %v1402_v18 = vld [vmem:[#allocation5 + $0xe0] sm:$0xff]   ;;  %v1405_v21 = vld [vmem:[#allocation5 + $0x28] sm:$0xff]  }
  0x60   :  { %1196 = vmatprep.subr.bf16.mxu0 %v1392_v8  ;;  %v1399_v15 = vld [vmem:[#allocation5 + $0x98] sm:$0xff]   ;;  %v1403_v19 = vld [vmem:[#allocation5 + $0xa0] sm:$0xff]   ;;  %v1406_v22 = vld [vmem:[#allocation5 + $0xe8] sm:$0xff]  }
  0x61   :  { %1217 = vmatpush3.bf16.msra.mxu1 %v1391_v7  ;;  %v1407_v23 = vld [vmem:[#allocation5 + $0xa8] sm:$0xff]   ;;  %v1408_v24 = vld [vmem:[#allocation5 + $0x70] sm:$0xff]   ;;  %v1412_v28 = vld [vmem:[#allocation5 + $0x78] sm:$0xff]  }
  0x62   :  { %1218 = vmatprep.subr.bf16.mxu1 %v1394_v10  ;;  %v1409_v25 = vld [vmem:[#allocation5 + $0x30] sm:$0xff]   ;;  %v1413_v29 = vld [vmem:[#allocation5 + $0x38] sm:$0xff]   ;;  %v100_v31 = vld [vmem:[#allocation2] sm:$0xff] }
  0x63   :  { %1197 = vmatpush3.bf16.msra.mxu0 %v1393_v9  ;;  %v1410_v26 = vld [vmem:[#allocation5 + $0xf0] sm:$0xff]   ;;  %v1414_v30 = vld [vmem:[#allocation5 + $0xf8] sm:$0xff]   ;;  %v1102_v32 = vcombine.low %v100_v31, %v100_v31  ;;  %v1103_v33 = vcombine.high %v100_v31, %v100_v31  ;;  %v1418_v35 = vld [vmem:[#allocation5 + $0x140] sm:$0xff]  }
  0x64   :  { %1198 = vmatprep.subr.bf16.mxu0 %v1396_v12  ;;  %v1411_v27 = vld [vmem:[#allocation5 + $0xb0] sm:$0xff]   ;;  %v1417_v34 = vld [vmem:[#allocation5 + $0xb8] sm:$0xff]   ;;  %v1421_v39 = vld [vmem:[#allocation5 + $0x100] sm:$0xff]  }
  0x65   :  { %1219 = vmatpush3.bf16.msra.mxu1 %v1395_v11  ;;  %v101_v36 = vld [vmem:[#allocation2 + $0x8] sm:$0xff]  ;;  %616 = vmatprep.mubr.bf16.mxu0 %v1103_v33  ;;  %v1422_v40 = vld [vmem:[#allocation5 + $0x180] sm:$0xff]   ;;  %v1429_v48 = vld [vmem:[#allocation5 + $0x158] sm:$0xff]  }
  0x66   :  { %1220 = vmatprep.subr.bf16.mxu1 %v1398_v14  ;;  %v1104_v37 = vcombine.low %v101_v36, %v101_v36  ;;  %v1105_v38 = vcombine.high %v101_v36, %v101_v36  ;;  %v1423_v41 = vld [vmem:[#allocation5 + $0x148] sm:$0xff]   ;;  %v1426_v45 = vld [vmem:[#allocation5 + $0x150] sm:$0xff]   ;;  %v1430_v49 = vld [vmem:[#allocation5 + $0x118] sm:$0xff]  }
  0x67   :  { %1199 = vmatpush3.bf16.msra.mxu0 %v1397_v13  ;;  %v1424_v43 = vld [vmem:[#allocation5 + $0x108] sm:$0xff]   ;;  %v1427_v46 = vld [vmem:[#allocation5 + $0x110] sm:$0xff]   ;;  %v1432_v50 = vld [vmem:[#allocation5 + $0x160] sm:$0xff]  }
  0x68   :  { %1200 = vmatprep.subr.bf16.mxu0 %v1400_v16  ;;  %656 = vmatprep.mubr.bf16.mxu1 %v1105_v38  ;;  %v1425_v44 = vld [vmem:[#allocation5 + $0x188] sm:$0xff]   ;;  %v1428_v47 = vld [vmem:[#allocation5 + $0x190] sm:$0xff]   ;;  %v1431_v51 = vld [vmem:[#allocation5 + $0x198] sm:$0xff]  }
  0x69   :  { %1221 = vmatpush3.bf16.msra.mxu1 %v1399_v15  ;;  %v1433_v52 = vld [vmem:[#allocation5 + $0x120] sm:$0xff]   ;;  %v1435_v53 = vld [vmem:[#allocation5 + $0x168] sm:$0xff]   ;;  %v1438_v56 = vld [vmem:[#allocation5 + $0x170] sm:$0xff]  }
  0x6a   :  { %1222 = vmatprep.subr.bf16.mxu1 %v1402_v18  ;;  %v1434_v54 = vld [vmem:[#allocation5 + $0x1a0] sm:$0xff]   ;;  %v1436_v55 = vld [vmem:[#allocation5 + $0x128] sm:$0xff]   ;;  %v1439_v58 = vld [vmem:[#allocation5 + $0x130] sm:$0xff]  }
  0x6b   :  { %1201 = vmatpush3.bf16.msra.mxu0 %v1401_v17  ;;  %v1437_v57 = vld [vmem:[#allocation5 + $0x1a8] sm:$0xff]   ;;  %v102_v59 = vld [vmem:[#allocation2 + $0x10] sm:$0xff]  ;;  %v1446_v2 = vld [vmem:[#allocation2 + $0x18] ss:$0 sps:$4 sm:$0xff]  }
  0x6c   :  { %1202 = vmatprep.subr.bf16.mxu0 %v1404_v20  ;;  %v1440_v60 = vld [vmem:[#allocation5 + $0x1b0] sm:$0xff]   ;;  %v1107_v61 = vcombine.high %v102_v59, %v102_v59  ;;  %v1441_v62 = vld [vmem:[#allocation5 + $0x178] sm:$0xff]   ;;  %v1106_v1 = vcombine.low %v102_v59, %v102_v59  ;;  %v1447_v3 = vld [vmem:[#allocation7] sm:$0xff]  }
  0x6d   :  { %1223 = vmatpush3.bf16.msra.mxu1 %v1403_v19  ;;  %v1442_v63 = vld [vmem:[#allocation5 + $0x138] sm:$0xff]   ;;  %v1448_v4 = vld [vmem:[#allocation7 + $0x8] sm:$0xff]   ;;  %v1449_v5 = vld [vmem:[#allocation7 + $0x10] sm:$0xff]  }
  0x6e   :  { %1224 = vmatprep.subr.bf16.mxu1 %v1406_v22  ;;  %v1445_v0 = vld [vmem:[#allocation5 + $0x1b8] sm:$0xff]   ;;  %v1451_v7 = vld [vmem:[#allocation7 + $0x20] sm:$0xff]   ;;  %v1452_v8 = vld [vmem:[#allocation7 + $0x28] sm:$0xff]  }
  0x6f   :  { %1203 = vmatpush3.bf16.msra.mxu0 %v1405_v21  ;;  %v1450_v6 = vld [vmem:[#allocation7 + $0x18] sm:$0xff]   ;;  %v1453_v9 = vld [vmem:[#allocation7 + $0x30] sm:$0xff]   ;;  %v1455_v11 = vld [vmem:[#allocation8] sm:$0xff]  }
  0x70   :  { %1204 = vmatprep.subr.bf16.mxu0 %v1408_v24  ;;  %v1454_v10 = vld [vmem:[#allocation7 + $0x38] sm:$0xff]   ;;  %v1456_v12 = vld [vmem:[#allocation8 + $0x8] sm:$0xff]   ;;  %v1457_v13 = vld [vmem:[#allocation8 + $0x10] sm:$0xff]  }
  0x71   :  { %1225 = vmatpush3.bf16.msra.mxu1 %v1407_v23  ;;  %v1458_v14 = vld [vmem:[#allocation8 + $0x18] sm:$0xff]   ;;  %v1459_v15 = vld [vmem:[#allocation8 + $0x20] sm:$0xff]   ;;  %v1460_v16 = vld [vmem:[#allocation8 + $0x28] sm:$0xff]  }
  0x72   :  { %1226 = vmatprep.subr.bf16.mxu1 %v1410_v26  ;;  %v1101_v18 = vld [vmem:[%s1809_s2] ss:$0 sm:$0xff] }
  0x73   :  { %1205 = vmatpush3.bf16.msra.mxu0 %v1409_v25 }
  0x74   :  { %1206 = vmatprep.subr.bf16.mxu0 %v1412_v28 }
  0x75   :  { %1227 = vmatpush3.bf16.msra.mxu1 %v1411_v27 }
  0x76   :  { %1228 = vmatprep.subr.bf16.mxu1 %v1414_v30 }
  0x77   :  { %1207 = vmatpush3.bf16.msra.mxu0 %v1413_v29 }
  0x78   :  { %1236 = vmatprep.subr.bf16.mxu0 %v1418_v35 }
  0x79   :  { %1229 = vmatpush3.bf16.msra.mxu1 %v1417_v34 }
  0x7a   :  { %617 = vmatmul.mubr.bf16.vlgmr.msra.gmra.mrb[0].mxu0 %v1102_v32  ;;  %1294 = vmatprep.subr.bf16.mxu1 %v1618_v42 }
  0x7b   :  { %1237 = vmatpush3.bf16.msra.mxu0 %v1421_v39  ;;  %696 = vmatprep.mubr.bf16.mxu0 %v1107_v61  ;;  %v1470_v61 = vld [vmem:[#allocation10 + $0x38] sm:$0xff]  }
  0x7c   :  { %657 = vmatmul.mubr.bf16.vlgmr.msra.gmra.mrb[0].mxu1 %v1104_v37  ;;  %1238 = vmatprep.subr.bf16.mxu0 %v1423_v41 }
  0x7d   :  { %1295 = vmatpush3.bf16.msra.mxu1 %v1422_v40  ;;  %1310 = vmatprep.mubr.msk.bf16.mxu1 %vm1619_vm0, %v1618_v42 }
  0x7e   :  { %1296 = vmatprep.subr.bf16.mxu1 %v1618_v42 }
  0x7f   :  { %1239 = vmatpush3.bf16.msra.mxu0 %v1424_v43 }
  0x80   :  { %1240 = vmatprep.subr.bf16.mxu0 %v1426_v45  ;;  %v1462_v45 = vld [vmem:[#allocation8 + $0x38] sm:$0xff]  }
  0x81   :  { %1297 = vmatpush3.bf16.msra.mxu1 %v1425_v44  ;;  %v1461_v44 = vld [vmem:[#allocation8 + $0x30] sm:$0xff]  }
  0x82   :  { %1298 = vmatprep.subr.bf16.mxu1 %v1618_v42 }
  0x83   :  { %1241 = vmatpush3.bf16.msra.mxu0 %v1427_v46  ;;  %v1463_v46 = vld [vmem:[#allocation10] sm:$0xff]  }
  0x84   :  { %1242 = vmatprep.subr.bf16.mxu0 %v1429_v48  ;;  %v1465_v48 = vld [vmem:[#allocation10 + $0x10] sm:$0xff]  }
  0x85   :  { %1299 = vmatpush3.bf16.msra.mxu1 %v1428_v47  ;;  %v1464_v47 = vld [vmem:[#allocation10 + $0x8] sm:$0xff]  }
  0x86   :  { %1300 = vmatprep.subr.bf16.mxu1 %v1618_v42 }
  0x87   :  { %1243 = vmatpush3.bf16.msra.mxu0 %v1430_v49  ;;  %v1466_v49 = vld [vmem:[#allocation10 + $0x18] sm:$0xff]  }
  0x88   :  { %1244 = vmatprep.subr.bf16.mxu0 %v1432_v50  ;;  %v1467_v50 = vld [vmem:[#allocation10 + $0x20] sm:$0xff]  }
  0x89   :  { %1301 = vmatpush3.bf16.msra.mxu1 %v1431_v51  ;;  %v1468_v51 = vld [vmem:[#allocation10 + $0x28] sm:$0xff]  }
  0x8a   :  { %1302 = vmatprep.subr.bf16.mxu1 %v1618_v42 }
  0x8b   :  { %1245 = vmatpush3.bf16.msra.mxu0 %v1433_v52  ;;  %v1165_v52 = vld [vmem:[%s1811_s4] ss:$0 sm:$0xff] }
  0x8c   :  { %1246 = vmatprep.subr.bf16.mxu0 %v1435_v53 }
  0x8d   :  { %1303 = vmatpush3.bf16.msra.mxu1 %v1434_v54 }
  0x8e   :  { %1304 = vmatprep.subr.bf16.mxu1 %v1618_v42 }
  0x8f   :  { %1247 = vmatpush3.bf16.msra.mxu0 %v1436_v55 }
  0x90   :  { %1248 = vmatprep.subr.bf16.mxu0 %v1438_v56 }
  0x91   :  { %1305 = vmatpush3.bf16.msra.mxu1 %v1437_v57 }
  0x92   :  { %1306 = vmatprep.subr.bf16.mxu1 %v1618_v42 }
  0x93   :  { %1249 = vmatpush3.bf16.msra.mxu0 %v1439_v58 }
  0x94   :  { %1250 = vmatprep.subr.bf16.mxu0 %v1441_v62  ;;  %v1174_v62 = vld [vmem:[%s1813_s6] ss:$0 sm:$0xff]  ;;  %s1581_s6 = scalar_lea.vmem %s1091_s12, 128 }
  0x95   :  { %1307 = vmatpush3.bf16.msra.mxu1 %v1440_v60  ;;  %v1469_v60 = vld [vmem:[#allocation10 + $0x30] sm:$0xff]   ;;  %p1582_p12 = scmp.ne.s32.totalorder %s1091_s12, %s1581_s6  ;;  %p1587_p0 = scmp.lt.s32.totalorder %s1581_s6, %s1581_s6 }
  0x96   :  { %1308 = vmatprep.subr.bf16.mxu1 %v1618_v42 }
  0x97   :  { %1251 = vmatpush3.bf16.msra.mxu0 %v1442_v63  ;;  %p1588_p1 = por %p1587_p0, %p1586_p13 }
  0x98   :  { %1314 = vmatprep.subr.bf16.mxu0 %v1618_v42 }
  0x99   :  { %1309 = vmatpush3.bf16.msra.mxu1 %v1445_v0  ;;  %p1589_p2 = pnand %p1588_p1, %p1582_p12 }
  0x9a   :  { %697 = vmatmul.mubr.bf16.vlgmr.msra.gmra.mrb[4].mxu0 %v1106_v1  ;;  %1334 = vmatprep.subr.bf16.mxu1 %v1618_v42 }
  0x9b   :  { %1330 = vmatprep.mubr.msk.bf16.mxu0 %vm1619_vm0, %v1618_v42  ;;  %1315 = vmatpush3.bf16.msra.mxu0 %v1447_v3 }
  0x9c   :  { %1311 = vmatmul.mubr.bf16.vlgmr.msra.gmra.mrb[4].mxu1 %v1446_v2  ;;  %1316 = vmatprep.subr.bf16.mxu0 %v1618_v42 }
  0x9d   :  { %1350 = vmatprep.mubr.msk.bf16.mxu1 %vm1619_vm0, %v1618_v42  ;;  %1335 = vmatpush3.bf16.msra.mxu1 %v1455_v11 }
  0x9e   :  { %1336 = vmatprep.subr.bf16.mxu1 %v1618_v42 }
  0x9f   :  { %1317 = vmatpush3.bf16.msra.mxu0 %v1448_v4 }
  0xa0   :  { %1318 = vmatprep.subr.bf16.mxu0 %v1618_v42 }
  0xa1   :  { %1337 = vmatpush3.bf16.msra.mxu1 %v1456_v12 }
  0xa2   :  { %1338 = vmatprep.subr.bf16.mxu1 %v1618_v42 }
  0xa3   :  { %1319 = vmatpush3.bf16.msra.mxu0 %v1449_v5 }
  0xa4   :  { %1320 = vmatprep.subr.bf16.mxu0 %v1618_v42 }
  0xa5   :  { %1339 = vmatpush3.bf16.msra.mxu1 %v1457_v13 }
  0xa6   :  { %1340 = vmatprep.subr.bf16.mxu1 %v1618_v42 }
  0xa7   :  { %1321 = vmatpush3.bf16.msra.mxu0 %v1450_v6  ;;  %v1183_v6 = vld [vmem:[%s1815_s8] ss:$0 sm:$0xff] }
  0xa8   :  { %1322 = vmatprep.subr.bf16.mxu0 %v1618_v42 }
  0xa9   :  { %1341 = vmatpush3.bf16.msra.mxu1 %v1458_v14 }
  0xaa   :  { %1342 = vmatprep.subr.bf16.mxu1 %v1618_v42 }
  0xab   :  { %1323 = vmatpush3.bf16.msra.mxu0 %v1451_v7 }
  0xac   :  { %1324 = vmatprep.subr.bf16.mxu0 %v1618_v42 }
  0xad   :  { %1343 = vmatpush3.bf16.msra.mxu1 %v1459_v15 }
  0xae   :  { %1344 = vmatprep.subr.bf16.mxu1 %v1618_v42 }
  0xaf   :  { %1325 = vmatpush3.bf16.msra.mxu0 %v1452_v8 }
  0xb0   :  { %1326 = vmatprep.subr.bf16.mxu0 %v1618_v42 }
  0xb1   :  { %1345 = vmatpush3.bf16.msra.mxu1 %v1460_v16 }
  0xb2   :  { %1346 = vmatprep.subr.bf16.mxu1 %v1618_v42 }
  0xb3   :  { %1327 = vmatpush3.bf16.msra.mxu0 %v1453_v9 }
  0xb4   :  { %1328 = vmatprep.subr.bf16.mxu0 %v1618_v42 }
  0xb5   :  { %1347 = vmatpush3.bf16.msra.mxu1 %v1461_v44 }
  0xb6   :  { %1348 = vmatprep.subr.bf16.mxu1 %v1618_v42 }
  0xb7   :  { %1329 = vmatpush3.bf16.msra.mxu0 %v1454_v10 }
  0xb8   :  { %1354 = vmatprep.subr.bf16.mxu0 %v1618_v42 }
  0xb9   :  { %1349 = vmatpush3.bf16.msra.mxu1 %v1462_v45 }
 0x14d   :  { %v1208_v17 = vpop.f32.mrb[0].mxu0 }
 0x14e   :  { %v1209_v19 = vpop.f32.mrb[1].mxu0 }
 0x14f   :  { %v1210_v20 = vadd.f32 %v1209_v19, %v1208_v17  ;;  %v1211_v21 = vpop.f32.mrb[2].mxu0  ;;  %v1230_v22 = vpop.f32.mrb[0].mxu1 }
 0x150   :  { %v1212_v23 = vpop.f32.mrb[3].mxu0  ;;  %v1231_v24 = vpop.f32.mrb[1].mxu1 }
 0x151   :  { %v619_v25 = vadd.f32 %v1210_v20, %v1101_v18  ;;  %v1232_v26 = vadd.f32 %v1231_v24, %v1230_v22  ;;  %v1233_v27 = vpop.f32.mrb[2].mxu1 }
 0x152   :  { %v1234_v28 = vpop.f32.mrb[3].mxu1 }
 0x153   :  { %v659_v29 = vadd.f32 %v1232_v26, %v619_v25 }
 0x16d   :  { %v1252_v30 = vpop.f32.mrb[4].mxu0 }
 0x16e   :  { %v1253_v31 = vpop.f32.mrb[5].mxu0 }
 0x16f   :  { %v1254_v32 = vadd.f32 %v1253_v31, %v1252_v30  ;;  %v1255_v33 = vpop.f32.mrb[6].mxu0  ;;  %v738_v34 = vpop.f32.mrb[4].mxu1 }
 0x170   :  { %v1256_v35 = vpop.f32.mrb[7].mxu0  ;;  %v1312_v36 = vpop.f32.mrb[5].mxu1 }
 0x171   :  { %v699_v37 = vadd.f32 %v1254_v32, %v659_v29  ;;  %v741_v38 = vpop.f32.mrb[6].mxu1 }
 0x172   :  { %v1313_v39 = vpop.f32.mrb[7].mxu1 }
 0x173   :  { %v739_v40 = vadd.f32 %v738_v34, %v699_v37 }
 0x175   :  { %v744_v41 = vmax.f32 %v739_v40, 0.0 }
 0x177   :  { %v745_v43 = vpack.c.bf16 %v744_v41, %v744_v41 }
 0x179   :  { %1331 = vmatmul.mubr.bf16.vlgmr.msra.gmra.mrb[8].mxu0 %v745_v43 }
 0x17a   :  { %1370 = vmatprep.mubr.msk.bf16.mxu0 %vm1619_vm0, %v1618_v42  ;;  %1355 = vmatpush3.bf16.msra.mxu0 %v1463_v46 }
 0x17b   :  { %1356 = vmatprep.subr.bf16.mxu0 %v1618_v42 }
 0x17e   :  { %1357 = vmatpush3.bf16.msra.mxu0 %v1464_v47 }
 0x17f   :  { %1358 = vmatprep.subr.bf16.mxu0 %v1618_v42 }
 0x182   :  { %1359 = vmatpush3.bf16.msra.mxu0 %v1465_v48 }
 0x183   :  { %1360 = vmatprep.subr.bf16.mxu0 %v1618_v42 }
 0x186   :  { %1361 = vmatpush3.bf16.msra.mxu0 %v1466_v49 }
 0x187   :  { %1362 = vmatprep.subr.bf16.mxu0 %v1618_v42 }
 0x18a   :  { %1363 = vmatpush3.bf16.msra.mxu0 %v1467_v50 }
 0x18b   :  { %1364 = vmatprep.subr.bf16.mxu0 %v1618_v42 }
 0x18e   :  { %1365 = vmatpush3.bf16.msra.mxu0 %v1468_v51 }
 0x18f   :  { %1366 = vmatprep.subr.bf16.mxu0 %v1618_v42 }
 0x192   :  { %1367 = vmatpush3.bf16.msra.mxu0 %v1469_v60 }
 0x193   :  { %1368 = vmatprep.subr.bf16.mxu0 %v1618_v42 }
 0x196   :  { %1369 = vmatpush3.bf16.msra.mxu0 %v1470_v61 }
 0x24c   :  { %v851_v53 = vpop.f32.mrb[8].mxu0 }
 0x24d   :  { %v852_v54 = vadd.f32 %v1165_v52, %v851_v53  ;;  %v1332_v55 = vpop.f32.mrb[9].mxu0 }
 0x24e   :  { %v854_v56 = vpop.f32.mrb[10].mxu0 }
 0x24f   :  { %v857_v57 = vmax.f32 %v852_v54, 0.0  ;;  %v1333_v58 = vpop.f32.mrb[11].mxu0 }
 0x251   :  { %v858_v59 = vpack.c.bf16 %v857_v57, %v857_v57 }
 0x253   :  { %1351 = vmatmul.mubr.bf16.vlgmr.msra.gmra.mrb[8].mxu1 %v858_v59 }
 0x326   :  { %v964_v63 = vpop.f32.mrb[8].mxu1 }
 0x327   :  { %v965_v0 = vadd.f32 %v1174_v62, %v964_v63  ;;  %v1352_v1 = vpop.f32.mrb[9].mxu1 }
 0x328   :  { %v967_v2 = vpop.f32.mrb[10].mxu1 }
 0x329   :  { %v970_v3 = vmax.f32 %v965_v0, 0.0  ;;  %v1353_v4 = vpop.f32.mrb[11].mxu1 }
 0x32b   :  { %v971_v5 = vpack.c.bf16 %v970_v3, %v970_v3 }
 0x32d   :  { %1371 = vmatmul.mubr.bf16.vlgmr.msra.gmra.mrb[12].mxu0 %v971_v5 }
 0x400   :  { %v1077_v42 = vpop.f32.mrb[12].mxu0 }
 0x401   :  { %v1078_v7 = vadd.f32 %v1183_v6, %v1077_v42  ;;  %v1372_v8 = vpop.f32.mrb[13].mxu0 }
 0x402   :  { %v1080_v9 = vpop.f32.mrb[14].mxu0 }
 0x403   :  { %1083 = vst [vmem:[#allocation11] sm:$0xff] %v1078_v7  ;;  %v1373_v10 = vpop.f32.mrb[15].mxu0 }
 0x404   :  { %1592 = shalt.err (!%p1589_p2)
}
 0x405   :  { %s1593_s8 = scalar_lea.hbm %s1816_s9, 128 }
 0x406   :  { %p1594_p3 = scmp.ne.s32.totalorder %s1816_s9, %s1593_s8  ;;  %p1597_p4 = scmp.lt.u32.totalorder %s1593_s8, %s1816_s9 }
 0x408   :  { %p1599_p5 = pnand %p1597_p4, %p1594_p3 }
 0x40a   :  { %1602 = shalt.err (!%p1599_p5)
}
 0x40b   :  { %1093 = dma.vmem_to_hbm [thread:$0]  %s1091_s12, 128, %s1816_s9, [#allocation4]  }
 0x40c   :  { %1609 = dma.done.wait [#allocation4], 128  }
 0x40d   :  { %1610 = vsyncadd [#allocation4], 4294967168 }
 0x40e   :  { %1097 = vsyncpa [#allocation3], 1 }
 0x40f   :  { %1098 = vsyncpa [#allocation6], 1 }
 0x410   :  { %1099 = vsyncpa [#allocation9], 1 }
 0x411   :  { %1100 = vsyncpa [#allocation4], 1 }

</bundles_post_ra>
